<compile_context>
chip_gen: v5e
topology: v5e:2x2
jax: 0.10.0
libtpu: 0.0.40
codegen_flags: <defaults>
</compile_context>

<pallas_src>
import jax
import jax.numpy as jnp
from jax.experimental import pallas as pl
from jax.experimental.pallas import tpu as pltpu

LANE = 128            # TPU lane width
BF16_SUBLANES = 16    # bf16 packs 16 rows per vreg sublane group
VMEM_BUDGET = 32 << 20  # conservative scoped-VMEM budget (fits all generations)


def _round_up(x, m):
    return ((x + m - 1) // m) * m


# --------------------------------------------------------------------------
# Kernel: 3x (Linear + ReLU) on one batch tile.
#   x tile:   (tb, in_dim)        bf16   (streamed, batch-tiled)
#   weights:  (in, out) layout    bf16   (VMEM-resident, canonical MK x KN)
#   biases:   (1, out)            f32
#   output:   (tb, out_pad)       f32    (lane-dense slab)
# --------------------------------------------------------------------------
def mlp_kernel(x_ref, w1_ref, b1_ref, w2_ref, b2_ref, w3_ref, b3_ref, o_ref):
    x = x_ref[...]  # already bf16 -- no in-kernel cast
    h1 = jnp.dot(x, w1_ref[...], preferred_element_type=jnp.float32)
    h1 = jnp.maximum(h1 + b1_ref[...], 0.0)

    h2 = jnp.dot(h1.astype(jnp.bfloat16), w2_ref[...],
                 preferred_element_type=jnp.float32)
    h2 = jnp.maximum(h2 + b2_ref[...], 0.0)

    h3 = jnp.dot(h2.astype(jnp.bfloat16), w3_ref[...],
                 preferred_element_type=jnp.float32)
    h3 = jnp.maximum(h3 + b3_ref[...], 0.0)

    o_ref[...] = h3.astype(o_ref.dtype)


# --------------------------------------------------------------------------
# One-time parameter prep (hoist OUT of the per-call hot path).
# PyTorch layout (out_features, in_features) -> kernel layout (in, out) bf16,
# with the last layer zero-padded to a full 128-lane slab.
# --------------------------------------------------------------------------
def prepare_params(params):
    w1, b1, w2, b2, w3, b3 = params
    feature_dim = w1.shape[0]
    out_dim = w3.shape[0]
    out_pad = max(LANE, pl.cdiv(out_dim, LANE) * LANE)

    w1k = jnp.asarray(w1, jnp.float32).T.astype(jnp.bfloat16)       # (in, F)
    w2k = jnp.asarray(w2, jnp.float32).T.astype(jnp.bfloat16)       # (F, F)
    w3k = jnp.zeros((feature_dim, out_pad), jnp.bfloat16)
    w3k = w3k.at[:, :out_dim].set(jnp.asarray(w3, jnp.float32).T
                                  .astype(jnp.bfloat16))            # (F, out_pad)
    b1k = jnp.asarray(b1, jnp.float32).reshape(1, feature_dim)
    b2k = jnp.asarray(b2, jnp.float32).reshape(1, feature_dim)
    b3k = jnp.zeros((1, out_pad), jnp.float32)
    b3k = b3k.at[0, :out_dim].set(jnp.asarray(b3, jnp.float32))

    return (w1k, b1k, w2k, b2k, w3k, b3k), out_dim, out_pad


def _pick_batch_tile(B, in_dim, out_pad, weights_bytes, batch_tile):
    """Multiple of 16 (bf16), fits VMEM budget, >=2 tiles when batch allows."""
    tb = min(batch_tile, _round_up(B, BF16_SUBLANES))
    tb = max(BF16_SUBLANES, (tb // BF16_SUBLANES) * BF16_SUBLANES)

    def vmem_bytes(t):
        # x double-buffer (bf16) + out double-buffer (f32) + resident weights.
        return 2 * t * in_dim * 2 + 2 * t * out_pad * 4 + 2 * weights_bytes

    while tb > BF16_SUBLANES and vmem_bytes(tb) > VMEM_BUDGET:
        tb = max(BF16_SUBLANES, (tb // 2 // BF16_SUBLANES) * BF16_SUBLANES)

    # v7x megacore: prefer >=2 batch tiles so both TensorCores get work.
    if tb >= 2 * BF16_SUBLANES and _round_up(B, tb) // tb < 2:
        tb = max(BF16_SUBLANES, (tb // 2 // BF16_SUBLANES) * BF16_SUBLANES)
    return tb


# --------------------------------------------------------------------------
# Forward pass.  kparams must come from prepare_params (kernel-ready arrays).
# --------------------------------------------------------------------------
def net_forward(x_nchw, kparams, out_dim, *, batch_tile=256,
                vmem_limit_bytes=None):
    w1k, b1k, w2k, b2k, w3k, b3k = kparams
    B = x_nchw.shape[0]
    in_dim = x_nchw.shape[1] * x_nchw.shape[2] * x_nchw.shape[3]
    assert w1k.shape[0] == in_dim, "param / input shape mismatch"
    feature_dim = w1k.shape[1]
    out_pad = w3k.shape[1]

    weights_bytes = (w1k.size + w2k.size + w3k.size) * 2 \
                    + (b1k.size + b2k.size + b3k.size) * 4
    tb = _pick_batch_tile(B, in_dim, out_pad, weights_bytes, batch_tile)

    # nn.Flatten (row-major, matches PyTorch) + single bf16 cast + single pad.
    x_flat = x_nchw.reshape(B, in_dim).astype(jnp.bfloat16)
    b_padded = _round_up(B, tb)
    if b_padded != B:
        x_flat = jnp.pad(x_flat, ((0, b_padded - B), (0, 0)))

    grid = (b_padded // tb,)

    # Constant index_map => weight/bias blocks never change => fetched from
    # HBM once and stay VMEM-resident across all batch tiles.
    def resident(shape):
        nd = len(shape)
        return pl.BlockSpec(shape, lambda i, _nd=nd: (0,) * _nd)

    flops = 2 * b_padded * (in_dim * feature_dim
                            + feature_dim * feature_dim
                            + feature_dim * out_pad)
    bytes_accessed = (x_flat.size * 2            # bf16 x stream
                      + weights_bytes            # resident params (once)
                      + b_padded * out_pad * 4)  # f32 output

    out = pl.pallas_call(
        mlp_kernel,
        out_shape=jax.ShapeDtypeStruct((b_padded, out_pad), jnp.float32),
        grid_spec=pltpu.PrefetchScalarGridSpec(
            num_scalar_prefetch=0,
            grid=grid,
            in_specs=[
                pl.BlockSpec((tb, in_dim), lambda i: (i, 0)),   # x: batch-tiled
                resident(w1k.shape), resident(b1k.shape),       # params:
                resident(w2k.shape), resident(b2k.shape),       #   VMEM-resident
                resident(w3k.shape), resident(b3k.shape),
            ],
            out_specs=pl.BlockSpec((tb, out_pad), lambda i: (i, 0)),
        ),
        compiler_params=pltpu.CompilerParams(
            dimension_semantics=("parallel",),                  # v7x: 2 TCs
            vmem_limit_bytes=vmem_limit_bytes),
        cost_estimate=pl.CostEstimate(
            flops=flops, transcendentals=0, bytes_accessed=bytes_accessed),
    )(x_flat, w1k, b1k, w2k, b2k, w3k, b3k)

    # Drop batch / lane padding.
    return out[:B, :out_dim]


# --------------------------------------------------------------------------
# Init + pure-JAX reference (PyTorch semantics, f32).
# --------------------------------------------------------------------------
def init_params(key, in_dim, feature_dim, out_dim):
    """PyTorch-Linear-style init: U(-1/sqrt(fan_in), 1/sqrt(fan_in))."""
    ks = jax.random.split(key, 6)

    def lin(kw, kb, fan_in, fan_out):
        bound = 1.0 / jnp.sqrt(fan_in)
        w = jax.random.uniform(kw, (fan_out, fan_in), jnp.float32, -bound, bound)
        b = jax.random.uniform(kb, (fan_out,), jnp.float32, -bound, bound)
        return w, b

    w1, b1 = lin(ks[0], ks[1], in_dim, feature_dim)
    w2, b2 = lin(ks[2], ks[3], feature_dim, feature_dim)
    w3, b3 = lin(ks[4], ks[5], feature_dim, out_dim)
    return (w1, b1, w2, b2, w3, b3)


def net_forward_ref(x_nchw, params):
    w1, b1, w2, b2, w3, b3 = params
    x = x_nchw.reshape(x_nchw.shape[0], -1)
    h = jnp.maximum(x @ w1.T + b1, 0.0)
    h = jnp.maximum(h @ w2.T + b2, 0.0)
    h = jnp.maximum(h @ w3.T + b3, 0.0)
    return h


if __name__ == "__main__":
    # Small shapes consistent with Flatten -> Linear(in_dim, ...).  B=64 with
    # the tile-picker exercises >=2 batch tiles with VMEM-resident weights.
    B, C, H, W = 64, 4, 16, 16          # in_dim = 4*16*16 = 1024
    in_dim = C * H * W
    feature_dim = 128
    out_dim = 32

    key = jax.random.PRNGKey(0)
    kx, kp = jax.random.split(key)
    x = jax.random.normal(kx, (B, C, H, W), jnp.float32)
    params = init_params(kp, in_dim, feature_dim, out_dim)

    # One-time weight prep (hoisted out of the per-forward hot path).
    kparams, out_dim_k, _ = prepare_params(params)

    out = jax.block_until_ready(net_forward(x, kparams, out_dim_k))
    ref = net_forward_ref(x, params)

    assert out.shape == (B, out_dim)
    # bf16 matmul inputs with f32 accumulation -> loosened tolerance vs f32 ref.
    max_err = float(jnp.max(jnp.abs(out - ref)))
    assert jnp.allclose(out, ref, atol=3e-2, rtol=3e-2), \
        f"mismatch vs reference (max abs err {max_err})"

    print("KERNEL_OK")
</pallas_src>

<mosaic_0001>
module attributes {stable_mosaic.version = 11 : i64} {
  func.func @mlp_kernel(%arg0: i32, %arg1: memref<32x1024xbf16, #tpu.memory_space<vmem>>, %arg2: memref<1024x128xbf16, #tpu.memory_space<vmem>>, %arg3: memref<1x128xf32, #tpu.memory_space<vmem>>, %arg4: memref<128x128xbf16, #tpu.memory_space<vmem>>, %arg5: memref<1x128xf32, #tpu.memory_space<vmem>>, %arg6: memref<128x128xbf16, #tpu.memory_space<vmem>>, %arg7: memref<1x128xf32, #tpu.memory_space<vmem>>, %arg8: memref<32x128xf32, #tpu.memory_space<vmem>>) attributes {dimension_semantics = [#tpu.dimension_semantics<parallel>], iteration_bounds = array<i64: 2>, scalar_prefetch = 0 : i64, scratch_operands = 0 : i64, tpu.core_type = #tpu.core_type<tc>, window_params = [{transform_indices = @transform_0, window_bounds = array<i64: 32, 1024>}, {pipeline_mode = #tpu.pipeline_mode<synchronous>, transform_indices = @transform_1, window_bounds = array<i64: 1024, 128>}, {pipeline_mode = #tpu.pipeline_mode<synchronous>, transform_indices = @transform_2, window_bounds = array<i64: 1, 128>}, {pipeline_mode = #tpu.pipeline_mode<synchronous>, transform_indices = @transform_3, window_bounds = array<i64: 128, 128>}, {pipeline_mode = #tpu.pipeline_mode<synchronous>, transform_indices = @transform_4, window_bounds = array<i64: 1, 128>}, {pipeline_mode = #tpu.pipeline_mode<synchronous>, transform_indices = @transform_5, window_bounds = array<i64: 128, 128>}, {pipeline_mode = #tpu.pipeline_mode<synchronous>, transform_indices = @transform_6, window_bounds = array<i64: 1, 128>}, {transform_indices = @transform_7, window_bounds = array<i64: 32, 128>}]} {
    %c0 = arith.constant 0 : index
    %c0_0 = arith.constant 0 : index
    %0 = vector.load %arg1[%c0, %c0_0] : memref<32x1024xbf16, #tpu.memory_space<vmem>>, vector<32x1024xbf16>
    %c0_1 = arith.constant 0 : index
    %c0_2 = arith.constant 0 : index
    %1 = vector.load %arg2[%c0_1, %c0_2] : memref<1024x128xbf16, #tpu.memory_space<vmem>>, vector<1024x128xbf16>
    %cst = arith.constant dense<0.000000e+00> : vector<32x128xf32>
    %2 = tpu.matmul %0, %1, %cst {dimension_numbers = #tpu.dot_dimension_numbers<[1], [0], [0], [1], [0, 0, 1, 1], [], []>} : vector<32x1024xbf16>, vector<1024x128xbf16>, vector<32x128xf32> -> vector<32x128xf32>
    %c0_3 = arith.constant 0 : index
    %c0_4 = arith.constant 0 : index
    %3 = vector.load %arg3[%c0_3, %c0_4] : memref<1x128xf32, #tpu.memory_space<vmem>>, vector<1x128xf32>
    %4 = vector.broadcast %3 : vector<1x128xf32> to vector<32x128xf32>
    %5 = arith.addf %2, %4 : vector<32x128xf32>
    %cst_5 = arith.constant 0.000000e+00 : f32
    %6 = vector.broadcast %cst_5 : f32 to vector<32x128xf32>
    %7 = arith.maximumf %5, %6 : vector<32x128xf32>
    %8 = arith.truncf %7 : vector<32x128xf32> to vector<32x128xbf16>
    %c0_6 = arith.constant 0 : index
    %c0_7 = arith.constant 0 : index
    %9 = vector.load %arg4[%c0_6, %c0_7] : memref<128x128xbf16, #tpu.memory_space<vmem>>, vector<128x128xbf16>
    %cst_8 = arith.constant dense<0.000000e+00> : vector<32x128xf32>
    %10 = tpu.matmul %8, %9, %cst_8 {dimension_numbers = #tpu.dot_dimension_numbers<[1], [0], [0], [1], [0, 0, 1, 1], [], []>} : vector<32x128xbf16>, vector<128x128xbf16>, vector<32x128xf32> -> vector<32x128xf32>
    %c0_9 = arith.constant 0 : index
    %c0_10 = arith.constant 0 : index
    %11 = vector.load %arg5[%c0_9, %c0_10] : memref<1x128xf32, #tpu.memory_space<vmem>>, vector<1x128xf32>
    %12 = vector.broadcast %11 : vector<1x128xf32> to vector<32x128xf32>
    %13 = arith.addf %10, %12 : vector<32x128xf32>
    %cst_11 = arith.constant 0.000000e+00 : f32
    %14 = vector.broadcast %cst_11 : f32 to vector<32x128xf32>
    %15 = arith.maximumf %13, %14 : vector<32x128xf32>
    %16 = arith.truncf %15 : vector<32x128xf32> to vector<32x128xbf16>
    %c0_12 = arith.constant 0 : index
    %c0_13 = arith.constant 0 : index
    %17 = vector.load %arg6[%c0_12, %c0_13] : memref<128x128xbf16, #tpu.memory_space<vmem>>, vector<128x128xbf16>
    %cst_14 = arith.constant dense<0.000000e+00> : vector<32x128xf32>
    %18 = tpu.matmul %16, %17, %cst_14 {dimension_numbers = #tpu.dot_dimension_numbers<[1], [0], [0], [1], [0, 0, 1, 1], [], []>} : vector<32x128xbf16>, vector<128x128xbf16>, vector<32x128xf32> -> vector<32x128xf32>
    %c0_15 = arith.constant 0 : index
    %c0_16 = arith.constant 0 : index
    %19 = vector.load %arg7[%c0_15, %c0_16] : memref<1x128xf32, #tpu.memory_space<vmem>>, vector<1x128xf32>
    %20 = vector.broadcast %19 : vector<1x128xf32> to vector<32x128xf32>
    %21 = arith.addf %18, %20 : vector<32x128xf32>
    %cst_17 = arith.constant 0.000000e+00 : f32
    %22 = vector.broadcast %cst_17 : f32 to vector<32x128xf32>
    %23 = arith.maximumf %21, %22 : vector<32x128xf32>
    %c0_18 = arith.constant 0 : index
    %c0_19 = arith.constant 0 : index
    %24 = vector.load %arg8[%c0_18, %c0_19] : memref<32x128xf32, #tpu.memory_space<vmem>>, vector<32x128xf32>
    tpu.vector_store %arg8[%c0_18, %c0_19], %23 {strides = array<i32>} : memref<32x128xf32, #tpu.memory_space<vmem>>, vector<32x128xf32>,
    return
  }
  func.func @transform_0(%arg0: i32) -> (i32, i32) {
    %c0_i32 = arith.constant 0 : i32
    %c0_i32_0 = arith.constant 0 : i32
    return %arg0, %c0_i32 : i32, i32
  }
  func.func @transform_1(%arg0: i32) -> (i32, i32) {
    %c0_i32 = arith.constant 0 : i32
    %c0_i32_0 = arith.constant 0 : i32
    %c0_i32_1 = arith.constant 0 : i32
    return %c0_i32, %c0_i32_0 : i32, i32
  }
  func.func @transform_2(%arg0: i32) -> (i32, i32) {
    %c0_i32 = arith.constant 0 : i32
    %c0_i32_0 = arith.constant 0 : i32
    %c0_i32_1 = arith.constant 0 : i32
    return %c0_i32, %c0_i32_0 : i32, i32
  }
  func.func @transform_3(%arg0: i32) -> (i32, i32) {
    %c0_i32 = arith.constant 0 : i32
    %c0_i32_0 = arith.constant 0 : i32
    %c0_i32_1 = arith.constant 0 : i32
    return %c0_i32, %c0_i32_0 : i32, i32
  }
  func.func @transform_4(%arg0: i32) -> (i32, i32) {
    %c0_i32 = arith.constant 0 : i32
    %c0_i32_0 = arith.constant 0 : i32
    %c0_i32_1 = arith.constant 0 : i32
    return %c0_i32, %c0_i32_0 : i32, i32
  }
  func.func @transform_5(%arg0: i32) -> (i32, i32) {
    %c0_i32 = arith.constant 0 : i32
    %c0_i32_0 = arith.constant 0 : i32
    %c0_i32_1 = arith.constant 0 : i32
    return %c0_i32, %c0_i32_0 : i32, i32
  }
  func.func @transform_6(%arg0: i32) -> (i32, i32) {
    %c0_i32 = arith.constant 0 : i32
    %c0_i32_0 = arith.constant 0 : i32
    %c0_i32_1 = arith.constant 0 : i32
    return %c0_i32, %c0_i32_0 : i32, i32
  }
  func.func @transform_7(%arg0: i32) -> (i32, i32) {
    %c0_i32 = arith.constant 0 : i32
    %c0_i32_0 = arith.constant 0 : i32
    return %arg0, %c0_i32 : i32, i32
  }
}

</mosaic_0001>

<bundles_post_ra>
// kernel: tpu_custom_call.1
= control target key start
LH: loop header
LB: loop body
LE: loop exit
PB: predicated region body
PF: predicated region fallthrough
CT: control target
= control target key end

     0   :  { %s2483_s0 = inlined_call_operand.hbm [shape: bf16[64,1024], index: 0, kind: input, shape index: {}]   ;;  %s2484_s1 = inlined_call_operand.hbm [shape: bf16[1024,128], index: 1, kind: input, shape index: {}]   ;;  %s2485_s2 = inlined_call_operand.vmem [shape: f32[1,128], index: 2, kind: input, shape index: {}]   ;;  %s2486_s3 = inlined_call_operand.hbm [shape: bf16[128,128], index: 3, kind: input, shape index: {}]   ;;  %s2487_s4 = inlined_call_operand.vmem [shape: f32[1,128], index: 4, kind: input, shape index: {}]   ;;  %s2488_s5 = inlined_call_operand.hbm [shape: bf16[128,128], index: 5, kind: input, shape index: {}]   ;;  %s2489_s6 = inlined_call_operand.vmem [shape: f32[1,128], index: 6, kind: input, shape index: {}]   ;;  %s2490_s7 = inlined_call_operand.hbm [shape: f32[64,128], index: 7, kind: output, shape index: {}]  }
   0x1   :  { %2491 = sst [smem:[#allocation15_spill]] %s2484_s1 }
   0x2   :  { %12 = vsyncpa [#allocation3], 0 }
   0x3   :  { %14 = vsyncpa [#allocation3 + $0x1], 0 }
   0x4   :  { %15 = vsyncpa [#allocation6], 0 }
   0x5   :  { %16 = vsyncpa [#allocation9], 0 }
   0x6   :  { %17 = vsyncpa [#allocation4], 0 }
   0x7   :  { %19 = vsyncpa [#allocation4 + $0x1], 0  ;;  %s2279_s24 = smov 0   ;;  %s2281_s25 = smov 0  }
   0x8   :  { %s2283_s26 = smov 0   ;;  %s2285_s27 = smov 0  }
   0x9 LB: > { %s2300_s28 = sadd.s32 4294967295, %s2228_s27   ;;  %s1428_s29 = sadd.s32 4294967294, %s2228_s27   ;;  %s2228_s27 = sphi %s2285_s27, %s2503_s27   ;;  %s2224_s26 = sphi %s2283_s26, %s2502_s26   ;;  %s2220_s25 = sphi %s2281_s25, %s2501_s25   ;;  %s2216_s24 = sphi %s2279_s24, %s2500_s24  }
   0xa   : > { %p45_p0 = scmp.ne.s32.totalorder %s2220_s25, %s2216_s24  ;;  %p46_p1 = scmp.eq.s32.totalorder %s2300_s28, 0 }
   0xb   : > { %p195_p2 = scmp.eq.s32.totalorder %s2300_s28, 1  ;;  %p201_p3 = scmp.eq.s32.totalorder %s1428_s29, 1 }
   0xc   : > { %p2309_p4 = por %p46_p1, %p45_p0  ;;  %p1429_p5 = scmp.ge.s32.totalorder %s2228_s27, 1 }
   0xd   : > { %p2314_p6 = por %p201_p3, %p45_p0  ;;  %p208_p7 = scmp.lt.s32.totalorder %s2228_s27, 3 }
   0xe   : > { %s2494_s1 = sld [smem:[#allocation15_spill]]  ;;  %s2230_s13 = smov [#allocation5]  }
   0xf   : > { %p2322_p8 = pnand %p1429_p5, %p208_p7  ;;  %s221_s14 = sshll.u32 %s2230_s13, 4  ;;  %s222_s14 = int_to_ptr.vmem [resolvable:$true] %s221_s14 }
  0x10   : > { %s236_s18 = sshll.u32 %s2486_s3, 4  ;;  %s2231_s19 = smov 64   ;;  %s237_s18 = int_to_ptr.hbm [resolvable:$true] %s236_s18 }
  0x11   : > { %p1964_p9 = pneg %p2322_p8  ;;  %s2232_s20 = smov 4  }
  0x12   : > { %s2233_s21 = smov [#allocation7]   ;;  %s253_s9 = sshll.u32 %s2488_s5, 4  ;;  %s254_s9 = int_to_ptr.hbm [resolvable:$true] %s253_s9 }
  0x13   : > { %p2330_p10 = pnand %p1964_p9, %p46_p1  ;;  %s238_s22 = sshll.u32 %s2233_s21, 4  ;;  %s239_s22 = int_to_ptr.vmem [resolvable:$true] %s238_s22 }
  0x14   : > { %s219_s11 = sshll.u32 %s2494_s1, 4  ;;  %s2234_s10 = smov [#allocation8]   ;;  %s220_s11 = int_to_ptr.hbm [resolvable:$true] %s219_s11 }
  0x15   : > { %1967 = dma.hbm_to_vmem [thread:$0]  (!%p2330_p10), %s220_s11, 8192, %s222_s14, [#allocation6], %s2231_s19, %s2231_s19, %s2232_s20  }
  0x16   : > { %1970 = dma.hbm_to_vmem [thread:$0]  (!%p2330_p10), %s237_s18, 1024, %s239_s22, [#allocation6], %s2231_s19, %s2231_s19, %s2232_s20  }
  0x17   : > { %s255_s13 = sshll.u32 %s2234_s10, 4  ;;  %s2346_s11 = sadd.s32 1, %s2228_s27   ;;  %s256_s13 = int_to_ptr.vmem [resolvable:$true] %s255_s13 }
  0x18   : > { %1973 = dma.hbm_to_vmem [thread:$0]  (!%p2330_p10), %s254_s9, 1024, %s256_s13, [#allocation9], %s2231_s19, %s2231_s19, %s2232_s20  }
  0x19   : > { %s29_s14 = ssub.s32 %s2228_s27, %s2346_s11  ;;  %s32_s16 = sadd.s32 1, %s2224_s26 }
  0x1a   : > { %p30_p12 = scmp.eq.s32.totalorder %s29_s14, 0  ;;  %p39_p13 = scmp.ne.s32.totalorder %s2224_s26, %s2220_s25 }
  0x1b   : > { %p40_p0 = scmp.eq.s32.totalorder %s2228_s27, 0  ;;  %p1985_p3 = scmp.lt.s32.totalorder %s2228_s27, 2 }
  0x1c   : > { %s2358_s17 = scalar_select %p30_p12, %s2224_s26, %s32_s16  }
  0x1d   : > { %p41_p5 = por %p40_p0, %p39_p13  ;;  %p2362_p7 = por %p195_p2, %p39_p13 }
  0x1e   : > { %s272_s21 = sand.u32 1, %s2224_s26   ;;  %s1834_s22 = sshll.u32 %s2228_s27, 7 }
  0x1f   : > { %s1434_s15 = sshll.u32 %s272_s21, 7  ;;  %s282_s20 = scalar_lea.hbm %s2483_s0, %s1834_s22 }
  0x20   : > { %s283_s29 = sshll.u32 %s282_s20, 4  ;;  %s276_s9 = scalar_lea.vmem [#allocation2], %s1434_s15  ;;  %s284_s29 = int_to_ptr.hbm [resolvable:$true] %s283_s29 }
  0x21   : > { %s285_s10 = sshll.u32 %s276_s9, 4  ;;  %p2373_p9 = pnand %p1985_p3, %p41_p5  ;;  %s286_s10 = int_to_ptr.vmem [resolvable:$true] %s285_s10 }
  0x22   : > { %s273_s14 = scalar_lea.sflag [#allocation3], %s272_s21  ;;  %s2124_s16 = sshra.s32 %s284_s29, 4  ;;  %s2125_s16 = int_to_ptr.hbm [resolvable:$true] %s2124_s16 }
  0x23   : > { %s2126_s1 = scalar_lea.hbm %s2125_s16, 128  ;;  %p2128_p10 = pneg %p2373_p9 }
  0x24   : > { %p2127_p2 = scmp.ne.s32.totalorder %s2125_s16, %s2126_s1  ;;  %s2131_s23 = scalar_lea.hbm %s2483_s0, 256 }
  0x25   : > { %p2132_p0 = scmp.lt.s32.totalorder %s2125_s16, %s2483_s0  ;;  %p2133_p3 = scmp.lt.s32.totalorder %s2131_s23, %s2126_s1 }
  0x26   : > { %p2129_p12 = pnand %p2128_p10, %p2127_p2 }
  0x27   : > { %p2134_p5 = por %p2133_p3, %p2132_p0 }
  0x28   : > { %p2130_p13 = pneg %p2129_p12 }
  0x2a   : > { %p2135_p11 = pnand %p2134_p5, %p2130_p13 }
  0x2c   : > { %2138 = shalt.err (!%p2135_p11)
}
  0x2d   : > { %s2235_s21 = smov 512   ;;  %s2236_s9 = smov 32  }
  0x2e   : > { %1977 = dma.hbm_to_vmem [thread:$0]  (!%p2373_p9), %s284_s29, 2048, %s286_s10, %s273_s14, %s2235_s21, %s2235_s21, %s2236_s9  }
  0x2f   : > { %297 = sbr.rel (%p2322_p8) target bundleno = 581 (0x245), region = 48  ;;  %s2390_s22 = sand.u32 (!%p2322_p8), 1, %s2220_s25  }
  0x30   : > { %s1439_s15 = sshll.u32 (!%p2322_p8), %s2390_s22, 7  ;;  %s300_s16 = scalar_lea.sflag (!%p2322_p8), [#allocation3], %s2390_s22 }
  0x31   : > { %s2394_s1 = scalar_lea.vmem (!%p2322_p8), [#allocation2], %s1439_s15 }
  0x34   : > { %2199 = dma.done.wait (%p2309_p4), %s300_s16, 2048  }
  0x35   : > { %2201 = vsyncadd (%p2309_p4), %s300_s16, 4294965248 }
  0x36   : > { %2203 = dma.done.wait (%p46_p1), [#allocation6], 9216  }
  0x37   : > { %2205 = vsyncadd (%p46_p1), [#allocation6], 4294958080 }
  0x38   : > { %2207 = dma.done.wait (%p46_p1), [#allocation9], 1024  }
  0x39   : > { %2209 = vsyncadd (%p46_p1), [#allocation9], 4294966272  ;;  %v1858_v0 = vld [vmem:[#allocation5 + $0x38] sm:$0xff]  ;;  %v1857_v4 = vld [vmem:[#allocation5 + $0x30] sm:$0xff]  ;;  %s1443_s23 = sshll.u32 %s2390_s22, 5  ;;  %s1931_s20 = sshll.u32 %s2300_s28, 5 }
  0x3a   : > { %v1866_v1 = vld [vmem:[#allocation5 + $0x78] sm:$0xff]  ;;  %964 = vmatpush.bf16.msra.mxu0 %v1858_v0  ;;  %v1865_v5 = vld [vmem:[#allocation5 + $0x70] sm:$0xff]  ;;  %v1856_v8 = vld [vmem:[#allocation5 + $0x28] sm:$0xff]  ;;  %s349_s19 = scalar_lea.vmem [#allocation10], %s1443_s23  ;;  %s1322_s15 = scalar_lea.hbm %s2490_s7, %s1931_s20 }
  0x3b   : > { %v1874_v2 = vld [vmem:[#allocation5 + $0xb8] sm:$0xff]  ;;  %983 = vmatpush.bf16.msra.mxu1 %v1866_v1  ;;  %v1873_v6 = vld [vmem:[#allocation5 + $0xb0] sm:$0xff]  ;;  %v1864_v9 = vld [vmem:[#allocation5 + $0x68] sm:$0xff]  ;;  %s1323_s16 = sshll.u32 %s349_s19, 4  ;;  %s1311_s30 = scalar_lea.sflag [#allocation4], %s2390_s22  ;;  %s1324_s16 = int_to_ptr.vmem [resolvable:$true] %s1323_s16 }
  0x3c   : > { %v1882_v3 = vld [vmem:[#allocation5 + $0xf8] sm:$0xff]  ;;  %1002 = vmatpush.bf16.msra.mxu2 %v1874_v2  ;;  %v1881_v7 = vld [vmem:[#allocation5 + $0xf0] sm:$0xff]  ;;  %v1872_v10 = vld [vmem:[#allocation5 + $0xa8] sm:$0xff]  ;;  %s2174_s13 = scalar_lea.hbm %s2490_s7, 64 }
  0x3d   : > { %1021 = vmatpush.bf16.msra.mxu3 %v1882_v3  ;;  %v1880_v11 = vld [vmem:[#allocation5 + $0xe8] sm:$0xff]  ;;  %v1855_v12 = vld [vmem:[#allocation5 + $0x20] sm:$0xff]  ;;  %v1854_v16 = vld [vmem:[#allocation5 + $0x18] sm:$0xff] }
  0x3e   : > { %965 = vmatpush.bf16.msra.mxu0 %v1857_v4  ;;  %v1863_v13 = vld [vmem:[#allocation5 + $0x60] sm:$0xff]  ;;  %v1862_v17 = vld [vmem:[#allocation5 + $0x58] sm:$0xff]  ;;  %v1853_v20 = vld [vmem:[#allocation5 + $0x10] sm:$0xff] }
  0x3f   : > { %984 = vmatpush.bf16.msra.mxu1 %v1865_v5  ;;  %v1871_v14 = vld [vmem:[#allocation5 + $0xa0] sm:$0xff]  ;;  %v1870_v18 = vld [vmem:[#allocation5 + $0x98] sm:$0xff]  ;;  %v1861_v21 = vld [vmem:[#allocation5 + $0x50] sm:$0xff] }
  0x40   : > { %1003 = vmatpush.bf16.msra.mxu2 %v1873_v6  ;;  %v1879_v15 = vld [vmem:[#allocation5 + $0xe0] sm:$0xff]  ;;  %v1878_v19 = vld [vmem:[#allocation5 + $0xd8] sm:$0xff]  ;;  %v1869_v22 = vld [vmem:[#allocation5 + $0x90] sm:$0xff] }
  0x41   : > { %1022 = vmatpush.bf16.msra.mxu3 %v1881_v7  ;;  %v1877_v23 = vld [vmem:[#allocation5 + $0xd0] sm:$0xff]  ;;  %v1852_v24 = vld [vmem:[#allocation5 + $0x8] sm:$0xff]  ;;  %v1851_v28 = vld [vmem:[#allocation5] sm:$0xff] }
  0x42   : > { %966 = vmatpush.bf16.msra.mxu0 %v1856_v8  ;;  %v1860_v25 = vld [vmem:[#allocation5 + $0x48] sm:$0xff]  ;;  %v1859_v29 = vld [vmem:[#allocation5 + $0x40] sm:$0xff]  ;;  %v1906_v40 = vld [vmem:[#allocation5 + $0x1b8] sm:$0xff] }
  0x43   : > { %985 = vmatpush.bf16.msra.mxu1 %v1864_v9  ;;  %v1868_v26 = vld [vmem:[#allocation5 + $0x88] sm:$0xff]  ;;  %v1446_v30 = vld [vmem:[%s2394_s1] sm:$0xf]  ;;  %v1835_v34 = vld [vmem:[%s2394_s1 + $0x4] sm:$0xf] }
  0x44   : > { %1004 = vmatpush.bf16.msra.mxu2 %v1872_v10  ;;  %v1876_v27 = vld [vmem:[#allocation5 + $0xc8] sm:$0xff]  ;;  %v1839_v31 = vld [vmem:[%s2394_s1 + $0x1c] sm:$0xf0]  ;;  %v1448_v35 = vld [vmem:[%s2394_s1 + $0x20] sm:$0xf0] }
  0x45   : > { %1023 = vmatpush.bf16.msra.mxu3 %v1880_v11  ;;  %v1867_v32 = vld [vmem:[#allocation5 + $0x80] sm:$0xff]  ;;  %v1454_v36 = vld [vmem:[%s2394_s1 + $0x8] sm:$0xf]  ;;  %v1836_v38 = vld [vmem:[%s2394_s1 + $0xc] sm:$0xf]  ;;  %v1447_v42 = vor.u32 %v1839_v31, %v1446_v30  ;;  %v1451_v43 = vor.u32 %v1835_v34, %v1448_v35 }
  0x46   : > { %967 = vmatpush.bf16.msra.mxu0 %v1855_v12  ;;  %v1875_v33 = vld [vmem:[#allocation5 + $0xc0] sm:$0xff]  ;;  %v1840_v37 = vld [vmem:[%s2394_s1 + $0x24] sm:$0xf0]  ;;  %v1456_v39 = vld [vmem:[%s2394_s1 + $0x28] sm:$0xf0] }
  0x47   : > { %986 = vmatpush.bf16.msra.mxu1 %v1863_v13  ;;  %v1890_v41 = vld [vmem:[#allocation5 + $0x138] sm:$0xff]  ;;  %v1455_v44 = vor.u32 %v1840_v37, %v1454_v36  ;;  %v1459_v45 = vor.u32 %v1836_v38, %v1456_v39  ;;  %v1905_v48 = vld [vmem:[#allocation5 + $0x1b0] sm:$0xff]  ;;  %v1904_v52 = vld [vmem:[#allocation5 + $0x1a8] sm:$0xff] }
  0x48   : > { %1005 = vmatpush.bf16.msra.mxu2 %v1871_v14  ;;  %v1898_v46 = vld [vmem:[#allocation5 + $0x178] sm:$0xff]  ;;  %v1889_v49 = vld [vmem:[#allocation5 + $0x130] sm:$0xff]  ;;  %v1888_v53 = vld [vmem:[#allocation5 + $0x128] sm:$0xff] }
  0x49   : > { %1024 = vmatpush.bf16.msra.mxu3 %v1879_v15  ;;  %v1914_v47 = vld [vmem:[#allocation5 + $0x1f8] sm:$0xff]  ;;  %v1897_v50 = vld [vmem:[#allocation5 + $0x170] sm:$0xff]  ;;  %v1896_v54 = vld [vmem:[#allocation5 + $0x168] sm:$0xff] }
  0x4a   : > { %968 = vmatpush.bf16.msra.mxu0 %v1854_v16  ;;  %v1913_v51 = vld [vmem:[#allocation5 + $0x1f0] sm:$0xff]  ;;  %v1912_v55 = vld [vmem:[#allocation5 + $0x1e8] sm:$0xff]  ;;  %v1903_v56 = vld [vmem:[#allocation5 + $0x1a0] sm:$0xff] }
  0x4b   : > { %987 = vmatpush.bf16.msra.mxu1 %v1862_v17  ;;  %v1887_v57 = vld [vmem:[#allocation5 + $0x120] sm:$0xff]  ;;  %v1486_v0 = vld [vmem:[%s2394_s1 + $0x48] sm:$0xf]  ;;  %v1844_v2 = vld [vmem:[%s2394_s1 + $0x4c] sm:$0xf] }
  0x4c   : > { %1006 = vmatpush.bf16.msra.mxu2 %v1870_v18  ;;  %v1895_v58 = vld [vmem:[#allocation5 + $0x160] sm:$0xff]  ;;  %v1848_v1 = vld [vmem:[%s2394_s1 + $0x64] sm:$0xf0]  ;;  %v1488_v3 = vld [vmem:[%s2394_s1 + $0x68] sm:$0xf0] }
  0x4d   : > { %1025 = vmatpush.bf16.msra.mxu3 %v1878_v19  ;;  %v1911_v59 = vld [vmem:[#allocation5 + $0x1e0] sm:$0xff]  ;;  %v1902_v4 = vld [vmem:[#allocation5 + $0x198] sm:$0xff]  ;;  %v1487_v8 = vor.u32 %v1848_v1, %v1486_v0  ;;  %v1491_v9 = vor.u32 %v1844_v2, %v1488_v3  ;;  %v1901_v12 = vld [vmem:[#allocation5 + $0x190] sm:$0xff] }
  0x4e   : > { %969 = vmatpush.bf16.msra.mxu0 %v1853_v20  ;;  %v1478_v60 = vld [vmem:[%s2394_s1 + $0x40] sm:$0xf]  ;;  %v1843_v62 = vld [vmem:[%s2394_s1 + $0x44] sm:$0xf]  ;;  %v1886_v5 = vld [vmem:[#allocation5 + $0x118] sm:$0xff] }
  0x4f   : > { %988 = vmatpush.bf16.msra.mxu1 %v1861_v21  ;;  %v1847_v61 = vld [vmem:[%s2394_s1 + $0x5c] sm:$0xf0]  ;;  %v1480_v63 = vld [vmem:[%s2394_s1 + $0x60] sm:$0xf0]  ;;  %v1894_v10 = vld [vmem:[#allocation5 + $0x158] sm:$0xff] }
  0x50   : > { %1007 = vmatpush.bf16.msra.mxu2 %v1869_v22  ;;  %v1479_v6 = vor.u32 %v1847_v61, %v1478_v60  ;;  %v1483_v7 = vor.u32 %v1843_v62, %v1480_v63  ;;  %v1910_v11 = vld [vmem:[#allocation5 + $0x1d8] sm:$0xff]  ;;  %v1885_v13 = vld [vmem:[#allocation5 + $0x110] sm:$0xff]  ;;  %v1900_v16 = vld [vmem:[#allocation5 + $0x188] sm:$0xff] }
  0x51   : > { %1026 = vmatpush.bf16.msra.mxu3 %v1877_v23  ;;  %v1893_v14 = vld [vmem:[#allocation5 + $0x150] sm:$0xff]  ;;  %v1884_v17 = vld [vmem:[#allocation5 + $0x108] sm:$0xff]  ;;  %v1899_v20 = vld [vmem:[#allocation5 + $0x180] sm:$0xff] }
  0x52   : > { %970 = vmatpush.bf16.msra.mxu0 %v1852_v24  ;;  %v1909_v15 = vld [vmem:[#allocation5 + $0x1d0] sm:$0xff]  ;;  %v1892_v18 = vld [vmem:[#allocation5 + $0x148] sm:$0xff]  ;;  %v1883_v21 = vld [vmem:[#allocation5 + $0x100] sm:$0xff] }
  0x53   : > { %989 = vmatpush.bf16.msra.mxu1 %v1860_v25  ;;  %v1908_v19 = vld [vmem:[#allocation5 + $0x1c8] sm:$0xff]  ;;  %v1891_v22 = vld [vmem:[#allocation5 + $0x140] sm:$0xff]  ;;  %v1462_v24 = vld [vmem:[%s2394_s1 + $0x10] sm:$0xf] }
  0x54   : > { %1008 = vmatpush.bf16.msra.mxu2 %v1868_v26  ;;  %v1907_v23 = vld [vmem:[#allocation5 + $0x1c0] sm:$0xff]  ;;  %v1841_v25 = vld [vmem:[%s2394_s1 + $0x2c] sm:$0xf0]  ;;  %v1837_v26 = vld [vmem:[%s2394_s1 + $0x14] sm:$0xf] }
  0x55   : > { %1027 = vmatpush.bf16.msra.mxu3 %v1876_v27  ;;  %v1464_v27 = vld [vmem:[%s2394_s1 + $0x30] sm:$0xf0]  ;;  %v1838_v30 = vld [vmem:[%s2394_s1 + $0x1c] sm:$0xf]  ;;  %v1494_v36 = vld [vmem:[%s2394_s1 + $0x50] sm:$0xf] }
  0x56   : > { %971 = vmatpush.bf16.msra.mxu0 %v1851_v28  ;;  %v1470_v28 = vld [vmem:[%s2394_s1 + $0x18] sm:$0xf]  ;;  %v1472_v31 = vld [vmem:[%s2394_s1 + $0x38] sm:$0xf0]  ;;  %v1849_v37 = vld [vmem:[%s2394_s1 + $0x6c] sm:$0xf0] }
  0x57   : > { %990 = vmatpush.bf16.msra.mxu1 %v1859_v29  ;;  %v1842_v29 = vld [vmem:[%s2394_s1 + $0x34] sm:$0xf0]  ;;  %v1475_v35 = vor.u32 %v1838_v30, %v1472_v31  ;;  %v1845_v38 = vld [vmem:[%s2394_s1 + $0x54] sm:$0xf]  ;;  %v1916_v0 = vld [vmem:[#allocation7 + $0x8] sm:$0xff] }
  0x58   : > { %1009 = vmatpush.bf16.msra.mxu2 %v1867_v32  ;;  %v1463_v32 = vor.u32 %v1841_v25, %v1462_v24  ;;  %v1471_v34 = vor.u32 %v1842_v29, %v1470_v28  ;;  %v1496_v39 = vld [vmem:[%s2394_s1 + $0x70] sm:$0xf0]  ;;  %v2031_v1 = vld [vmem:[%s2485_s2] ss:$0 sm:$0xff]  ;;  %v1930_v24 = vld [vmem:[#allocation8 + $0x38] sm:$0xff] }
  0x59   : > { %1028 = vmatpush.bf16.msra.mxu3 %v1875_v33  ;;  %972 = vmatmul.bf16.vlgmr.msra.gmra.mxu0 %v1447_v42  ;;  %v1467_v33 = vor.u32 %v1837_v26, %v1464_v27  ;;  %v1846_v42 = vld [vmem:[%s2394_s1 + $0x5c] sm:$0xf]  ;;  %v1915_v2 = vld [vmem:[#allocation7] sm:$0xff]  ;;  %v1929_v28 = vld [vmem:[#allocation8 + $0x30] sm:$0xff] }
  0x5a   : > { %1040 = vmatpush.bf16.msrb.mxu0 %v1890_v41  ;;  %991 = vmatmul.bf16.vlgmr.msra.gmra.mxu1 %v1451_v43  ;;  %v1850_v41 = vld [vmem:[%s2394_s1 + $0x74] sm:$0xf0]  ;;  %v1504_v43 = vld [vmem:[%s2394_s1 + $0x78] sm:$0xf0] }
  0x5b   : > { %1010 = vmatmul.bf16.vlgmr.msra.gmra.mxu2 %v1455_v44  ;;  %1059 = vmatpush.bf16.msrb.mxu1 %v1898_v46  ;;  %v1495_v44 = vor.u32 %v1849_v37, %v1494_v36 }
  0x5c   : > { %1078 = vmatpush.bf16.msrb.mxu2 %v1906_v40  ;;  %1029 = vmatmul.bf16.vlgmr.msra.gmra.mxu3 %v1459_v45  ;;  %v1502_v40 = vld [vmem:[%s2394_s1 + $0x58] sm:$0xf]  ;;  %v1499_v45 = vor.u32 %v1845_v38, %v1496_v39  ;;  %s1325_s1 = sshll.u32 %s1322_s15, 4  ;;  %s1326_s1 = int_to_ptr.hbm [resolvable:$true] %s1325_s1 }
  0x5d   : > { %1097 = vmatpush.bf16.msrb.mxu3 %v1914_v47  ;;  %v1503_v46 = vor.u32 %v1850_v41, %v1502_v40  ;;  %v1507_v47 = vor.u32 %v1846_v42, %v1504_v43  ;;  %v1927_v42 = vld [vmem:[#allocation8 + $0x20] sm:$0xff]  ;;  %s2168_s12 = sshra.s32 %s1326_s1, 4  ;;  %s2169_s12 = int_to_ptr.hbm [resolvable:$true] %s2168_s12 }
  0x5e   : > { %1041 = vmatpush.bf16.msrb.mxu0 %v1889_v49  ;;  %v1921_v49 = vld [vmem:[#allocation7 + $0x30] sm:$0xff]  ;;  %s2170_s29 = scalar_lea.hbm %s2169_s12, 32  ;;  %p2175_p11 = scmp.lt.s32.totalorder %s2169_s12, %s2490_s7 }
  0x5f   : > { %1060 = vmatpush.bf16.msrb.mxu1 %v1897_v50  ;;  %p2171_p1 = scmp.ne.s32.totalorder %s2169_s12, %s2170_s29  ;;  %p2176_p9 = scmp.lt.s32.totalorder %s2174_s13, %s2170_s29 }
  0x60   : > { %1079 = vmatpush.bf16.msrb.mxu2 %v1905_v48  ;;  %v1922_v48 = vld [vmem:[#allocation7 + $0x38] sm:$0xff] }
  0x61   : > { %1098 = vmatpush.bf16.msrb.mxu3 %v1913_v51  ;;  %p2172_p4 = pnand %p2171_p1, %p2362_p7  ;;  %p2177_p2 = por %p2176_p9, %p2175_p11 }
  0x62   : > { %1042 = vmatpush.bf16.msrb.mxu0 %v1888_v53  ;;  %v1919_v53 = vld [vmem:[#allocation7 + $0x20] sm:$0xff] }
  0x63   : > { %1061 = vmatpush.bf16.msrb.mxu1 %v1896_v54  ;;  %p2173_p8 = pneg %p2172_p4 }
  0x64   : > { %1080 = vmatpush.bf16.msrb.mxu2 %v1904_v52  ;;  %v1920_v52 = vld [vmem:[#allocation7 + $0x28] sm:$0xff] }
  0x65   : > { %1099 = vmatpush.bf16.msrb.mxu3 %v1912_v55  ;;  %p2178_p10 = pnand %p2177_p2, %p2173_p8 }
  0x66   : > { %1043 = vmatpush.bf16.msrb.mxu0 %v1887_v57 }
  0x67   : > { %1062 = vmatpush.bf16.msrb.mxu1 %v1895_v58  ;;  %v1918_v58 = vld [vmem:[#allocation7 + $0x18] sm:$0xff] }
  0x68   : > { %1081 = vmatpush.bf16.msrb.mxu2 %v1903_v56 }
  0x69   : > { %1100 = vmatpush.bf16.msrb.mxu3 %v1911_v59  ;;  %977 = vmatmul.bf16.gmra.mxu0 %v1479_v6  ;;  %v1917_v59 = vld [vmem:[#allocation7 + $0x10] sm:$0xff] }
  0x6a   : > { %1044 = vmatpush.bf16.msrb.mxu0 %v1886_v5  ;;  %996 = vmatmul.bf16.gmra.mxu1 %v1483_v7 }
  0x6b   : > { %1015 = vmatmul.bf16.gmra.mxu2 %v1487_v8  ;;  %1063 = vmatpush.bf16.msrb.mxu1 %v1894_v10 }
  0x6c   : > { %1082 = vmatpush.bf16.msrb.mxu2 %v1902_v4  ;;  %1034 = vmatmul.bf16.gmra.mxu3 %v1491_v9 }
  0x6d   : > { %1101 = vmatpush.bf16.msrb.mxu3 %v1910_v11 }
  0x6e   : > { %1045 = vmatpush.bf16.msrb.mxu0 %v1885_v13 }
  0x6f   : > { %1064 = vmatpush.bf16.msrb.mxu1 %v1893_v14 }
  0x70   : > { %1083 = vmatpush.bf16.msrb.mxu2 %v1901_v12 }
  0x71   : > { %1102 = vmatpush.bf16.msrb.mxu3 %v1909_v15 }
  0x72   : > { %1046 = vmatpush.bf16.msrb.mxu0 %v1884_v17 }
  0x73   : > { %1065 = vmatpush.bf16.msrb.mxu1 %v1892_v18 }
  0x74   : > { %1084 = vmatpush.bf16.msrb.mxu2 %v1900_v16 }
  0x75   : > { %1103 = vmatpush.bf16.msrb.mxu3 %v1908_v19 }
  0x76   : > { %1047 = vmatpush.bf16.msrb.mxu0 %v1883_v21 }
  0x77   : > { %1066 = vmatpush.bf16.msrb.mxu1 %v1891_v22 }
  0x78   : > { %1085 = vmatpush.bf16.msrb.mxu2 %v1899_v20 }
  0x79   : > { %1104 = vmatpush.bf16.msrb.mxu3 %v1907_v23  ;;  %1048 = vmatmul.bf16.vlgmr.msrb.gmra.mxu0 %v1463_v32 }
  0x7a   : > { %1067 = vmatmul.bf16.vlgmr.msrb.gmra.mxu1 %v1467_v33  ;;  %1190 = vmatpush.bf16.msra.mxu0 %v1922_v48  ;;  %v1928_v33 = vld [vmem:[#allocation8 + $0x28] sm:$0xff] }
  0x7b   : > { %1086 = vmatmul.bf16.vlgmr.msrb.gmra.mxu2 %v1471_v34  ;;  %1283 = vmatpush.bf16.msra.mxu1 %v1930_v24 }
  0x7c   : > { %1105 = vmatmul.bf16.vlgmr.msrb.gmra.mxu3 %v1475_v35  ;;  %1932 = vmatpush.bf16.msra.mxu2 %v1922_v48 }
  0x7d   : > { %1940 = vmatpush.bf16.msra.mxu3 %v1930_v24 }
  0x7e   : > { %1191 = vmatpush.bf16.msra.mxu0 %v1921_v49 }
  0x7f   : > { %1284 = vmatpush.bf16.msra.mxu1 %v1929_v28 }
  0x80   : > { %1933 = vmatpush.bf16.msra.mxu2 %v1921_v49 }
  0x81   : > { %1941 = vmatpush.bf16.msra.mxu3 %v1929_v28 }
  0x82   : > { %1192 = vmatpush.bf16.msra.mxu0 %v1920_v52 }
  0x83   : > { %1285 = vmatpush.bf16.msra.mxu1 %v1928_v33 }
  0x84   : > { %1934 = vmatpush.bf16.msra.mxu2 %v1920_v52 }
  0x85   : > { %1942 = vmatpush.bf16.msra.mxu3 %v1928_v33 }
  0x86   : > { %1193 = vmatpush.bf16.msra.mxu0 %v1919_v53 }
  0x87   : > { %1286 = vmatpush.bf16.msra.mxu1 %v1927_v42 }
  0x88   : > { %1935 = vmatpush.bf16.msra.mxu2 %v1919_v53 }
  0x89   : > { %1053 = vmatmul.bf16.gmra.mxu0 %v1495_v44  ;;  %1943 = vmatpush.bf16.msra.mxu3 %v1927_v42 }
  0x8a   : > { %1072 = vmatmul.bf16.gmra.mxu1 %v1499_v45  ;;  %1194 = vmatpush.bf16.msra.mxu0 %v1918_v58 }
  0x8b   : > { %1091 = vmatmul.bf16.gmra.mxu2 %v1503_v46 }
  0x8c   : > { %1110 = vmatmul.bf16.gmra.mxu3 %v1507_v47  ;;  %1936 = vmatpush.bf16.msra.mxu2 %v1918_v58 }
  0x8e   : > { %1195 = vmatpush.bf16.msra.mxu0 %v1917_v59 }
  0x90   : > { %1937 = vmatpush.bf16.msra.mxu2 %v1917_v59 }
  0x92   : > { %1196 = vmatpush.bf16.msra.mxu0 %v1916_v0 }
  0x94   : > { %1938 = vmatpush.bf16.msra.mxu2 %v1916_v0 }
  0x96   : > { %1197 = vmatpush.bf16.msra.mxu0 %v1915_v2 }
  0x98   : > { %1939 = vmatpush.bf16.msra.mxu2 %v1915_v2 }
  0xd6   : > { %v973_v50 = vpop.f32.mrf.mxu0 }
  0xd7   : > { %v992_v51 = vpop.f32.mrf.mxu1  ;;  %v974_v5 = vadd.f32 %v2031_v1, %v973_v50 }
  0xd9   : > { %v993_v8 = vadd.f32 %v992_v51, %v974_v5  ;;  %v1924_v5 = vld [vmem:[#allocation8 + $0x8] sm:$0xff] }
  0xde   : > { %v1011_v54 = vpop.f32.mrf.mxu2  ;;  %v975_v56 = vpop.f32.mrf.mxu0 }
  0xdf   : > { %v1030_v55 = vpop.f32.mrf.mxu3  ;;  %v994_v57 = vpop.f32.mrf.mxu1  ;;  %v976_v9 = vadd.f32 %v2031_v1, %v975_v56  ;;  %v1012_v12 = vadd.f32 %v1011_v54, %v993_v8  ;;  %v2032_v8 = vld [vmem:[%s2487_s4] ss:$0 sm:$0xff] }
  0xe1   : > { %v995_v15 = vadd.f32 %v994_v57, %v976_v9  ;;  %v1031_v16 = vadd.f32 %v1030_v55, %v1012_v12 }
  0xe6   : > { %v1013_v60 = vpop.f32.mrf.mxu2  ;;  %v978_v62 = vpop.f32.mrf.mxu0 }
  0xe7   : > { %v1032_v61 = vpop.f32.mrf.mxu3  ;;  %v997_v63 = vpop.f32.mrf.mxu1  ;;  %v1014_v17 = vadd.f32 %v1013_v60, %v995_v15  ;;  %v979_v21 = vadd.f32 %v2031_v1, %v978_v62 }
  0xe9   : > { %v1033_v20 = vadd.f32 %v1032_v61, %v1014_v17  ;;  %v998_v29 = vadd.f32 %v997_v63, %v979_v21 }
  0xee   : > { %v1016_v3 = vpop.f32.mrf.mxu2  ;;  %v980_v6 = vpop.f32.mrf.mxu0 }
  0xef   : > { %v1035_v4 = vpop.f32.mrf.mxu3  ;;  %v999_v7 = vpop.f32.mrf.mxu1  ;;  %v981_v31 = vadd.f32 %v2031_v1, %v980_v6  ;;  %v1017_v35 = vadd.f32 %v1016_v3, %v998_v29  ;;  %v1926_v3 = vld [vmem:[#allocation8 + $0x18] sm:$0xff]  ;;  %v1923_v6 = vld [vmem:[#allocation8] sm:$0xff] }
  0xf0   : > { %1287 = vmatpush.bf16.msra.mxu1 %v1926_v3  ;;  %1944 = vmatpush.bf16.msra.mxu3 %v1926_v3 }
  0xf1   : > { %v1000_v40 = vadd.f32 %v999_v7, %v981_v31  ;;  %v1036_v44 = vadd.f32 %v1035_v4, %v1017_v35  ;;  %v1925_v4 = vld [vmem:[#allocation8 + $0x10] sm:$0xff] }
  0xf4   : > { %1288 = vmatpush.bf16.msra.mxu1 %v1925_v4  ;;  %1945 = vmatpush.bf16.msra.mxu3 %v1925_v4 }
  0xf6   : > { %v1018_v10 = vpop.f32.mrf.mxu2  ;;  %v1049_v13 = vpop.f32.mrf.mxu0 }
  0xf7   : > { %v1037_v11 = vpop.f32.mrf.mxu3  ;;  %v1068_v14 = vpop.f32.mrf.mxu1  ;;  %v1050_v18 = vadd.f32 %v1049_v13, %v1031_v16  ;;  %v1019_v45 = vadd.f32 %v1018_v10, %v1000_v40 }
  0xf8   : > { %1289 = vmatpush.bf16.msra.mxu1 %v1924_v5  ;;  %1946 = vmatpush.bf16.msra.mxu3 %v1924_v5 }
  0xf9   : > { %v1069_v26 = vadd.f32 %v1068_v14, %v1050_v18  ;;  %v1038_v51 = vadd.f32 %v1037_v11, %v1019_v45 }
  0xfc   : > { %1290 = vmatpush.bf16.msra.mxu1 %v1923_v6  ;;  %1947 = vmatpush.bf16.msra.mxu3 %v1923_v6 }
  0xfe   : > { %v1087_v19 = vpop.f32.mrf.mxu2  ;;  %v1051_v23 = vpop.f32.mrf.mxu0 }
  0xff   : > { %v1106_v22 = vpop.f32.mrf.mxu3  ;;  %v1070_v25 = vpop.f32.mrf.mxu1  ;;  %v1052_v27 = vadd.f32 %v1051_v23, %v1033_v20  ;;  %v1088_v30 = vadd.f32 %v1087_v19, %v1069_v26 }
 0x101   : > { %v1071_v32 = vadd.f32 %v1070_v25, %v1052_v27  ;;  %v1107_v36 = vadd.f32 %v1106_v22, %v1088_v30  ;;  %v2033_v22 = vld [vmem:[%s2489_s6] ss:$0 sm:$0xff] }
 0x103   : > { %v1116_v46 = vmax.f32 %v1107_v36, 0.0 }
 0x106   : > { %v1089_v34 = vpop.f32.mrf.mxu2  ;;  %v1054_v39 = vpop.f32.mrf.mxu0 }
 0x107   : > { %v1090_v37 = vadd.f32 %v1089_v34, %v1071_v32  ;;  %v1108_v38 = vpop.f32.mrf.mxu3  ;;  %v1073_v43 = vpop.f32.mrf.mxu1  ;;  %v1055_v49 = vadd.f32 %v1054_v39, %v1036_v44 }
 0x109   : > { %v1109_v41 = vadd.f32 %v1108_v38, %v1090_v37  ;;  %v1074_v54 = vadd.f32 %v1073_v43, %v1055_v49 }
 0x10b   : > { %v1117_v47 = vmax.f32 %v1109_v41, 0.0 }
 0x10d   : > { %v1120_v48 = vpack.c.bf16 %v1117_v47, %v1116_v46 }
 0x10e   : > { %v1092_v50 = vpop.f32.mrf.mxu2  ;;  %v1056_v53 = vpop.f32.mrf.mxu0 }
 0x10f   : > { %v1111_v52 = vpop.f32.mrf.mxu3  ;;  %1198 = vmatmul.bf16.vlgmr.msra.gmra.mxu0 %v1120_v48  ;;  %v1057_v55 = vadd.f32 %v1056_v53, %v1038_v51  ;;  %v1093_v56 = vadd.f32 %v1092_v50, %v1074_v54  ;;  %v1075_v57 = vpop.f32.mrf.mxu1 }
 0x111   : > { %v1076_v58 = vadd.f32 %v1075_v57, %v1057_v55  ;;  %v1112_v60 = vadd.f32 %v1111_v52, %v1093_v56 }
 0x113   : > { %v1118_v0 = vmax.f32 %v1112_v60, 0.0 }
 0x116   : > { %v1094_v59 = vpop.f32.mrf.mxu2 }
 0x117   : > { %v1095_v61 = vadd.f32 %v1094_v59, %v1076_v58  ;;  %v1113_v62 = vpop.f32.mrf.mxu3 }
 0x119   : > { %v1114_v63 = vadd.f32 %v1113_v62, %v1095_v61 }
 0x11b   : > { %v1119_v1 = vmax.f32 %v1114_v63, 0.0 }
 0x11d   : > { %v1121_v2 = vpack.c.bf16 %v1119_v1, %v1118_v0 }
 0x11f   : > { %1203 = vmatmul.bf16.vlgmr.msra.gmra.mxu2 %v1121_v2 }
 0x18c   : > { %v1199_v7 = vpop.f32.mrf.mxu0 }
 0x18d   : > { %v1200_v9 = vadd.f32 %v2032_v8, %v1199_v7 }
 0x18f   : > { %v1209_v12 = vmax.f32 %v1200_v9, 0.0 }
 0x194   : > { %v1201_v10 = vpop.f32.mrf.mxu0 }
 0x195   : > { %v1202_v11 = vadd.f32 %v2032_v8, %v1201_v10 }
 0x197   : > { %v1210_v13 = vmax.f32 %v1202_v11, 0.0 }
 0x199   : > { %v1213_v14 = vpack.c.bf16 %v1210_v13, %v1209_v12 }
 0x19b   : > { %1291 = vmatmul.bf16.vlgmr.msra.gmra.mxu1 %v1213_v14 }
 0x1a2   : > { %v1204_v15 = vpop.f32.mrf.mxu2 }
 0x1a3   : > { %v1205_v16 = vadd.f32 %v2032_v8, %v1204_v15 }
 0x1a5   : > { %v1211_v19 = vmax.f32 %v1205_v16, 0.0 }
 0x1aa   : > { %v1206_v17 = vpop.f32.mrf.mxu2 }
 0x1ab   : > { %v1207_v18 = vadd.f32 %v2032_v8, %v1206_v17 }
 0x1ad   : > { %v1212_v20 = vmax.f32 %v1207_v18, 0.0 }
 0x1af   : > { %v1214_v21 = vpack.c.bf16 %v1212_v20, %v1211_v19 }
 0x1b1   : > { %1296 = vmatmul.bf16.vlgmr.msra.gmra.mxu3 %v1214_v21 }
 0x218   : > { %v1292_v23 = vpop.f32.mrf.mxu1 }
 0x219   : > { %v1293_v24 = vadd.f32 %v2033_v22, %v1292_v23 }
 0x21b   : > { %v1302_v25 = vmax.f32 %v1293_v24, 0.0 }
 0x21d   : > { %1306 = vst [vmem:[%s349_s19] sm:$0xff] %v1302_v25 }
 0x220   : > { %v1294_v26 = vpop.f32.mrf.mxu1 }
 0x221   : > { %v1295_v27 = vadd.f32 %v2033_v22, %v1294_v26 }
 0x223   : > { %v1303_v28 = vmax.f32 %v1295_v27, 0.0 }
 0x225   : > { %1307 = vst [vmem:[%s349_s19 + $0x8] sm:$0xff] %v1303_v28 }
 0x234   : > { %v1297_v29 = vpop.f32.mrf.mxu3 }
 0x235   : > { %v1298_v30 = vadd.f32 %v2033_v22, %v1297_v29 }
 0x237   : > { %v1304_v31 = vmax.f32 %v1298_v30, 0.0 }
 0x239   : > { %1308 = vst [vmem:[%s349_s19 + $0x10] sm:$0xff] %v1304_v31 }
 0x23c   : > { %v1299_v32 = vpop.f32.mrf.mxu3 }
 0x23d   : > { %v1300_v33 = vadd.f32 %v2033_v22, %v1299_v32 }
 0x23f   : > { %v1305_v34 = vmax.f32 %v1300_v33, 0.0 }
 0x241   : > { %1309 = vst [vmem:[%s349_s19 + $0x18] sm:$0xff] %v1305_v34 }
 0x242   : > { %2181 = shalt.err (!%p2178_p10)
}
 0x243   : > { %s2237_s22 = smov 128   ;;  %s2238_s19 = smov 8  }
 0x244   : > { %1962 = dma.vmem_to_hbm [thread:$0]  (%p2362_p7), %s1324_s16, 512, %s1326_s1, %s1311_s30, %s2237_s22, %s2237_s22, %s2238_s19  }
 0x245 PF: > { %s1340_s20 = sand.u32 1, %s2216_s24   ;;  %p2499_p12 = scmp.ge.s32.totalorder %s2228_s27, 2 }
 0x246   : > { %s1341_s21 = scalar_lea.sflag [#allocation4], %s1340_s20 }
 0x247   : > { %p1979_p13 = pnand %p2499_p12, %p2314_p6 }
 0x249   : > { %p1980_p0 = pneg %p1979_p13 }
 0x24b   : > { %2211 = dma.done.wait (%p1980_p0), %s1341_s21, 512  }
 0x24c   : > { %2213 = vsyncadd (%p1980_p0), %s1341_s21, 4294966784  ;;  %p22_p3 = scmp.ge.s32.totalorder %s2346_s11, 4   ;;  %s2500_s24 = smov %s2220_s25 }
 0x24d   : > { %s2501_s25 = smov %s2224_s26  ;;  %s2502_s26 = smov %s2358_s17 }
 0x24e   : > { %s2503_s27 = smov %s2346_s11  ;;  %24 = sbr.rel (!%p22_p3) target bundleno = 9 (0x9), region = 105 }
 0x253   :  { %1347 = vsyncpa [#allocation3], 1 }
 0x254   :  { %1349 = vsyncpa [#allocation3 + $0x1], 1 }
 0x255   :  { %1350 = vsyncpa [#allocation6], 1 }
 0x256   :  { %1351 = vsyncpa [#allocation9], 1 }
 0x257   :  { %1352 = vsyncpa [#allocation4], 1 }
 0x258   :  { %1354 = vsyncpa [#allocation4 + $0x1], 1 }

</bundles_post_ra>
